<compile_context>
chip_gen: v5e
topology: v5e:2x2
jax: 0.10.0
libtpu: 0.0.40
codegen_flags: <defaults>
</compile_context>

<pallas_src>
import functools

import jax
import jax.numpy as jnp
from jax.experimental import pallas as pl
from jax.experimental.pallas import tpu as pltpu

_LANES = 128
# Lane-dense candidate widths for the flattened 2D view (largest first).
_COL_CANDIDATES = (4096, 2048, 1024, 512, 256, 128)
# ~2 MiB per block: large enough to sit near the HBM roofline, small enough
# that double-buffered in+out fits the default scoped-VMEM limit everywhere.
_TARGET_BLOCK_BYTES = 2 << 20


def _sublane_min(dtype):
    # Packed-sublane minimum: 32-bit -> 8, 16-bit -> 16, 8-bit -> 32.
    return max(8, 32 // jnp.dtype(dtype).itemsize)


def _neg_scale_kernel(g_ref, o_ref, *, neg_lambda):
    # Backward: dx = -lambda * g (pure VPU multiply fused with the copy).
    o_ref[...] = g_ref[...] * neg_lambda


def _reverse_grad(g, lambda_):
    """Elementwise dx = -lambda * g via a single lane-dense Pallas kernel."""
    n = g.size
    if n == 0:
        return g
    dtype = g.dtype
    itemsize = jnp.dtype(dtype).itemsize
    sub_min = _sublane_min(dtype)

    # Lane-dense 2D view [rows, cols] of the flattened gradient.  The common
    # case (conv / transformer activations) divides evenly -> free reshape,
    # no padding copies.
    cols = next((c for c in _COL_CANDIDATES if n % c == 0), None)
    pad = 0
    if cols is None:
        # Rare ragged fallback: pad up to one lane-dense chunk.
        # TODO(synk): mask a ragged tail in-kernel instead to avoid the pad copy.
        cols = 8 * _LANES
        pad = (-n) % (sub_min * cols)
    flat = g.reshape(-1)
    if pad:
        flat = jnp.concatenate([flat, jnp.zeros((pad,), dtype=dtype)])
    rows = flat.shape[0] // cols
    slab = flat.reshape(rows, cols)

    # ~2 MiB blocks; if the slab is smaller, one block equal to the full
    # array dims (which lifts the (sub_min, 128) divisibility requirement).
    tile_r = max(sub_min,
                 (_TARGET_BLOCK_BYTES // (cols * itemsize)) // sub_min * sub_min)
    if tile_r >= rows:
        block = (rows, cols)
        grid = (1,)
    else:
        block = (tile_r, cols)            # (sub_min, 128)-aligned block
        grid = (pl.cdiv(rows, tile_r),)   # ragged last block is masked by Pallas

    kernel = functools.partial(_neg_scale_kernel, neg_lambda=-float(lambda_))
    out = pl.pallas_call(
        kernel,
        out_shape=jax.ShapeDtypeStruct(slab.shape, dtype),
        grid_spec=pltpu.PrefetchScalarGridSpec(
            num_scalar_prefetch=0,
            grid=grid,
            in_specs=[pl.BlockSpec(block, lambda i: (i, 0))],
            out_specs=pl.BlockSpec(block, lambda i: (i, 0)),
        ),
        # Pure in-place scale: reuse the incoming gradient's HBM buffer.
        input_output_aliases={0: 0},
        compiler_params=pltpu.CompilerParams(
            dimension_semantics=("parallel",)),
    )(slab)

    out = out.reshape(-1)
    if pad:
        out = out[:n]
    return out.reshape(g.shape)


@functools.partial(jax.custom_vjp, nondiff_argnums=(1,))
def gradient_reversal(x, lambda_=1.0):
    """Forward: identity (true no-op). Backward: grads * (-lambda)."""
    return x


def _grl_fwd(x, lambda_):
    return x, None


def _grl_bwd(lambda_, _res, g):
    return (_reverse_grad(g, lambda_),)


gradient_reversal.defvjp(_grl_fwd, _grl_bwd)


class GradientReversal:
    """JAX/Pallas port of the PyTorch GradientReversal module."""

    def __init__(self, lambda_=1.0):
        self.lambda_ = float(lambda_)

    def __call__(self, x):
        return gradient_reversal(x, self.lambda_)


if __name__ == "__main__":
    key = jax.random.PRNGKey(0)
    # NCHW input, consistent with typical PyTorch conv-feature inputs.
    x = jax.random.normal(key, (2, 4, 16, 16), dtype=jnp.float32)

    grl = GradientReversal(lambda_=1.0)

    # Forward: identity (no kernel, no HBM traffic).
    y = jax.block_until_ready(grl(x))
    assert y.shape == x.shape and y.dtype == x.dtype
    assert jnp.allclose(y, x), "forward must be identity"

    # Backward: Pallas kernel computes -lambda * upstream grad.
    loss_fn = lambda t: jnp.sum(grl(t) * 2.0)
    g = jax.block_until_ready(jax.grad(loss_fn)(x))
    assert jnp.allclose(g, -2.0 * jnp.ones_like(x)), "backward must be -lambda*g"

    # Non-unit lambda + a ragged (non-128-multiple) shape exercises both the
    # aligned fast path and the padded fallback.
    grl_half = GradientReversal(lambda_=0.5)
    x2 = jax.random.normal(jax.random.PRNGKey(1), (3, 5, 7), dtype=jnp.float32)
    g2 = jax.block_until_ready(jax.grad(lambda t: jnp.sum(grl_half(t)))(x2))
    assert jnp.allclose(g2, -0.5 * jnp.ones_like(x2)), "lambda scaling wrong"

    print("KERNEL_OK")
</pallas_src>

<mosaic_0001>
module attributes {stable_mosaic.version = 11 : i64} {
  func.func @_neg_scale_kernel(%arg0: i32, %arg1: memref<1x2048xf32, #tpu.memory_space<vmem>>, %arg2: memref<1x2048xf32, #tpu.memory_space<vmem>>) attributes {dimension_semantics = [#tpu.dimension_semantics<parallel>], iteration_bounds = array<i64: 1>, scalar_prefetch = 0 : i64, scratch_operands = 0 : i64, tpu.core_type = #tpu.core_type<tc>, window_params = [{transform_indices = @transform_0, window_bounds = array<i64: 1, 2048>}, {transform_indices = @transform_1, window_bounds = array<i64: 1, 2048>}]} {
    %c0 = arith.constant 0 : index
    %c0_0 = arith.constant 0 : index
    %0 = vector.load %arg1[%c0, %c0_0] : memref<1x2048xf32, #tpu.memory_space<vmem>>, vector<1x2048xf32>
    %cst = arith.constant -1.000000e+00 : f32
    %1 = vector.broadcast %cst : f32 to vector<1x2048xf32>
    %2 = arith.mulf %0, %1 : vector<1x2048xf32>
    %c0_1 = arith.constant 0 : index
    %c0_2 = arith.constant 0 : index
    %3 = vector.load %arg2[%c0_1, %c0_2] : memref<1x2048xf32, #tpu.memory_space<vmem>>, vector<1x2048xf32>
    tpu.vector_store %arg2[%c0_1, %c0_2], %2 {strides = array<i32>} : memref<1x2048xf32, #tpu.memory_space<vmem>>, vector<1x2048xf32>,
    return
  }
  func.func @transform_0(%arg0: i32) -> (i32, i32) {
    %c0_i32 = arith.constant 0 : i32
    %c0_i32_0 = arith.constant 0 : i32
    return %arg0, %c0_i32 : i32, i32
  }
  func.func @transform_1(%arg0: i32) -> (i32, i32) {
    %c0_i32 = arith.constant 0 : i32
    %c0_i32_0 = arith.constant 0 : i32
    return %arg0, %c0_i32 : i32, i32
  }
}

</mosaic_0001>

<bundles_post_ra>
// kernel: tpu_custom_call.1
= control target key start
LH: loop header
LB: loop body
LE: loop exit
PB: predicated region body
PF: predicated region fallthrough
CT: control target
= control target key end

     0   :  { %6 = vsyncpa [#allocation3], 0  ;;  %s118_s0 = inlined_call_operand.hbm [shape: f32[1,2048], index: 0, kind: input, shape index: {}, may-alias: {0,1}]   ;;  %s119_s1 = inlined_call_operand.hbm [shape: f32[1,2048], index: 1, kind: output, shape index: {}, may-alias: {0,1}]  }
   0x1   :  { %7 = vsyncpa [#allocation4], 0  ;;  %s13_s8 = sshll.u32 %s118_s0, 4  ;;  %s100_s9 = smov [#allocation2]   ;;  %s14_s8 = int_to_ptr.hbm [resolvable:$true] %s13_s8 }
   0x2   :  { %s15_s10 = sshll.u32 %s100_s9, 4  ;;  %s16_s10 = int_to_ptr.vmem [resolvable:$true] %s15_s10 }
   0x3   :  { %18 = dma.hbm_to_vmem [thread:$0]  %s14_s8, 256, %s16_s10, [#allocation3]  }
   0x4   :  { %96 = dma.done.wait [#allocation3], 256  }
   0x5   :  { %97 = vsyncadd [#allocation3], 4294967040  ;;  %s101_s11 = smov [#allocation5]   ;;  %s36_s15 = sshll.u32 %s119_s1, 4  ;;  %v23_v0 = vld [vmem:[#allocation2] sm:$0xff]  ;;  %v24_v1 = vld [vmem:[#allocation2 + $0x8] sm:$0xff]  ;;  %s37_s15 = int_to_ptr.hbm [resolvable:$true] %s36_s15 }
   0x6   :  { %s34_s12 = sshll.u32 %s101_s11, 4  ;;  %v25_v2 = vmul.f32 -1.0, %v23_v0  ;;  %v26_v3 = vmul.f32 -1.0, %v24_v1  ;;  %s35_s12 = int_to_ptr.vmem [resolvable:$true] %s34_s12 }
   0x8   :  { %27 = vst [vmem:[#allocation5] sm:$0xff] %v25_v2 }
   0x9   :  { %28 = vst [vmem:[#allocation5 + $0x8] sm:$0xff] %v26_v3 }
   0xa   :  { %39 = dma.vmem_to_hbm [thread:$0]  %s35_s12, 256, %s37_s15, [#allocation4]  }
   0xb   :  { %98 = dma.done.wait [#allocation4], 256  }
   0xc   :  { %99 = vsyncadd [#allocation4], 4294967040 }
   0xd   :  { %44 = vsyncpa [#allocation3], 1 }
   0xe   :  { %45 = vsyncpa [#allocation4], 1 }

</bundles_post_ra>
